<compile_context>
chip_gen: v7x
topology: tpu7x:2x2x1
jax: 0.10.0
libtpu: 0.0.40
codegen_flags: <defaults>
</compile_context>

<pallas_src>
import functools

import numpy as np
import jax
import jax.numpy as jnp
from jax.experimental import pallas as pl
from jax.experimental.pallas import tpu as pltpu


# ----------------------------------------------------------------------------
# Generation-aware tiling helpers
# ----------------------------------------------------------------------------
@functools.lru_cache(maxsize=None)
def _num_tensorcores():
    """TensorCores addressable from one Pallas program (megacore sharding)."""
    try:
        kind = jax.devices()[0].device_kind.lower()
    except Exception:
        return 1
    if any(tag in kind for tag in ("v4", "v5p", "v7", "7x")):
        return 2
    return 1


def _choose_tm(M):
    """M tile for the fused matmuls.

    v5e/v6e (1 TC): one full-M block — splitting these tiny matmuls only adds
    per-grid-step overhead and halves MXU M fill.
    v4/v5p/v7x (2 TCs): split into 2 "parallel" blocks only when each half
    still has >=256 rows of work.  A soft cap keeps blocks VMEM-friendly if
    the batch is ever scaled up.
    """
    tm = M
    if _num_tensorcores() >= 2 and M >= 512 and M % 2 == 0 and (M // 2) % 8 == 0:
        tm = M // 2
    while tm > 4096 and tm % 2 == 0 and (tm // 2) % 8 == 0 and M % (tm // 2) == 0:
        tm //= 2
    return tm


# ----------------------------------------------------------------------------
# Pallas kernels
# ----------------------------------------------------------------------------
def _mm_bias_kernel(a_ref, b_ref, bias_ref, o_ref, *, act):
    """o = act(a @ b + bias) — single K step, bf16 operands, f32 accumulate."""
    out = jnp.dot(a_ref[...], b_ref[...], preferred_element_type=jnp.float32)
    out = out + bias_ref[...]
    if act == "relu":
        out = jnp.maximum(out, 0.0)
    o_ref[...] = out.astype(o_ref.dtype)


def _mm_bias_res_kernel(a_ref, b_ref, bias_ref, r_ref, o_ref):
    """o = relu(a @ b + bias + residual) — identity-shortcut conv3 epilogue."""
    out = jnp.dot(a_ref[...], b_ref[...], preferred_element_type=jnp.float32)
    out = out + bias_ref[...] + r_ref[...].astype(jnp.float32)
    o_ref[...] = jnp.maximum(out, 0.0).astype(o_ref.dtype)


def _mm_bias_ds_kernel(a_ref, b_ref, x_ref, ws_ref, bias_ref, o_ref):
    """o = relu(a @ b + x @ ws + bias) — conv3 with fused downsample shortcut.

    Two dots share one f32 accumulator; bias already holds b3 + bs."""
    acc = jnp.dot(a_ref[...], b_ref[...], preferred_element_type=jnp.float32)
    acc = acc + jnp.dot(x_ref[...], ws_ref[...],
                        preferred_element_type=jnp.float32)
    o_ref[...] = jnp.maximum(acc + bias_ref[...], 0.0).astype(o_ref.dtype)


def _conv_win_kernel(x_ref, w_ref, bias_ref, o_ref, *, ho, wo, offs, act):
    """Window-grouped conv: a few full-slab matmuls per image.

    x_ref:    (1, Hq, Wq, CP)    space-to-depth input (CP = s*s*Cin)
    w_ref:    (NW, CP, Cout)     per-window packed weights (zero rows for
                                 phases a window does not cover)
    bias_ref: (1, Cout) f32
    o_ref:    (1, Ho*Wo, Cout)   one lane-dense slab store per image
    """
    cp = x_ref.shape[-1]
    cout = o_ref.shape[-1]
    acc = jnp.zeros((ho * wo, cout), jnp.float32)
    for t, (r0, c0) in enumerate(offs):
        win = x_ref[0, r0:r0 + ho, c0:c0 + wo, :]          # (Ho, Wo, CP)
        acc = acc + jnp.dot(win.reshape(ho * wo, cp), w_ref[t],
                            preferred_element_type=jnp.float32)
    out = acc + bias_ref[...]
    if act == "relu":
        out = jnp.maximum(out, 0.0)
    o_ref[0] = out.astype(o_ref.dtype)


def _maxpool_kernel(x_ref, o_ref, *, ho, wo, cin, offs):
    """3x3/s2 max-pool: elementwise max over 9 unit-stride VMEM windows."""
    m = None
    for (r0, c0, p) in offs:
        win = x_ref[0, r0:r0 + ho, c0:c0 + wo, :][..., p * cin:(p + 1) * cin]
        m = win if m is None else jnp.maximum(m, win)
    o_ref[0] = m


def _gap_fc_kernel(x_ref, w_ref, b_ref, o_ref):
    """Fused AdaptiveAvgPool2d(1) + Linear head (tensors here are a few KB).

    The pooled mean is cast to bf16 before the MXU matmul (weights are bf16);
    this is a small, documented precision difference vs an f32 torch head."""
    g = jnp.mean(x_ref[...].astype(jnp.float32), axis=1)    # (B, C)
    out = jnp.dot(g.astype(jnp.bfloat16), w_ref[...],
                  preferred_element_type=jnp.float32) + b_ref[...]
    o_ref[...] = out


# ----------------------------------------------------------------------------
# Kernel wrappers
# ----------------------------------------------------------------------------
def pallas_matmul(a, b, bias, act="none", residual=None, shortcut=None,
                  out_dtype=None):
    """out = act(a @ b + bias [+ residual | + shortcut projection]).

    a: (M, K) bf16, b: (K, N) bf16, bias: (N,) f32.
    residual: (M, N) bf16 -> relu(a@b + bias + residual)          (identity sc)
    shortcut: (xs (M, Ks), ws (Ks, N), bs (N,)) ->
              relu(a@b + xs@ws + bias + bs)                       (downsample sc)
    Single K step (K always fits VMEM here); grid over M only; K / N use
    full-dim blocks so no padding / slicing is ever needed.
    """
    M, K = a.shape
    K2, N = b.shape
    assert K == K2
    if out_dtype is None:
        out_dtype = a.dtype
    tm = _choose_tm(M)
    bias2 = bias.astype(jnp.float32).reshape(1, N)

    in_specs = [pl.BlockSpec((tm, K), lambda i: (i, 0)),
                pl.BlockSpec((K, N), lambda i: (0, 0))]
    args = [a, b]
    if shortcut is not None:
        xs, ws, bs = shortcut
        Ks = xs.shape[1]
        bias2 = bias2 + bs.astype(jnp.float32).reshape(1, N)
        in_specs += [pl.BlockSpec((tm, Ks), lambda i: (i, 0)),
                     pl.BlockSpec((Ks, N), lambda i: (0, 0)),
                     pl.BlockSpec((1, N), lambda i: (0, 0))]
        args += [xs, ws, bias2]
        kern = _mm_bias_ds_kernel                 # ReLU always fused here
    elif residual is not None:
        in_specs += [pl.BlockSpec((1, N), lambda i: (0, 0)),
                     pl.BlockSpec((tm, N), lambda i: (i, 0))]
        args += [bias2, residual]
        kern = _mm_bias_res_kernel                # ReLU always fused here
    else:
        in_specs += [pl.BlockSpec((1, N), lambda i: (0, 0))]
        args += [bias2]
        kern = functools.partial(_mm_bias_kernel, act=act)

    return pl.pallas_call(
        kern,
        out_shape=jax.ShapeDtypeStruct((M, N), out_dtype),
        grid_spec=pltpu.PrefetchScalarGridSpec(
            num_scalar_prefetch=0,
            grid=(M // tm,),
            in_specs=in_specs,
            out_specs=pl.BlockSpec((tm, N), lambda i: (i, 0)),
        ),
        compiler_params=pltpu.CompilerParams(
            dimension_semantics=("parallel",)),
    )(*args)


def _space_to_depth(x, kh, kw, stride, padding, pad_value=0.0):
    """Pad + space-to-depth so every conv/pool tap is a unit-stride window.

    Returns (xs, Ho, Wo) with xs: (B, Hq, Wq, stride*stride*C); tap (i, j)
    reads xs[:, i//s : i//s+Ho, j//s : j//s+Wo, p*C:(p+1)*C] with
    p = (i % s) * s + (j % s).  Total size == padded input (no KH*KW blow-up).
    """
    B, H, W, C = x.shape
    s = stride
    Ho = (H + 2 * padding - kh) // s + 1
    Wo = (W + 2 * padding - kw) // s + 1
    Hq = Ho + (kh - 1) // s
    Wq = Wo + (kw - 1) // s
    xp = jnp.pad(x, ((0, 0),
                     (padding, s * Hq - H - padding),
                     (padding, s * Wq - W - padding),
                     (0, 0)),
                 constant_values=pad_value)
    if s == 1:
        return xp, Ho, Wo
    xp = xp.reshape(B, Hq, s, Wq, s, C)
    xp = jnp.transpose(xp, (0, 1, 3, 2, 4, 5)).reshape(B, Hq, Wq, s * s * C)
    return xp, Ho, Wo


def _pack_tap_weights(w, stride):
    """(KH, KW, Cin, Cout) conv weights -> per-window packed weights.

    Taps are grouped by their space-to-depth window offset (kh//s, kw//s);
    inside a window the tap for phase (kh%s, kw%s) occupies channel rows
    [p*Cin:(p+1)*Cin] of a (s*s*Cin, Cout) matrix (zero rows for phases the
    window does not cover).  Returns (wp (NW, s*s*Cin, Cout), offs)."""
    KH, KW, Cin, Cout = w.shape
    s = stride
    nwh = (KH - 1) // s + 1
    nww = (KW - 1) // s + 1
    zeros = jnp.zeros((Cin, Cout), w.dtype)
    wins, offs = [], []
    for r0 in range(nwh):
        for c0 in range(nww):
            parts = []
            for pr in range(s):
                for pc in range(s):
                    kh, kw = r0 * s + pr, c0 * s + pc
                    parts.append(w[kh, kw] if (kh < KH and kw < KW) else zeros)
            wins.append(jnp.concatenate(parts, axis=0))     # (s*s*Cin, Cout)
            offs.append((r0, c0))
    return jnp.stack(wins, axis=0), tuple(offs)


def conv2d_spatial(x, w, bias, stride=1, padding=1, act="relu"):
    """KxK conv (3x3 convs and the 7x7 stem) as window-grouped slab matmuls.

    x: (B, H, W, Cin) bf16, w: (KH, KW, Cin, Cout) bf16, bias: (Cout,) f32.
    Returns (B, Ho, Wo, Cout) bf16.
    """
    B, H, W, Cin = x.shape
    KH, KW, _, Cout = w.shape
    s = stride
    xs, Ho, Wo = _space_to_depth(x, KH, KW, s, padding)
    Hq, Wq, CP = xs.shape[1], xs.shape[2], xs.shape[3]
    wp, offs = _pack_tap_weights(w, s)                       # (NW, CP, Cout)
    bias2 = bias.astype(jnp.float32).reshape(1, Cout)

    kern = functools.partial(_conv_win_kernel, ho=Ho, wo=Wo, offs=offs,
                             act=act)
    out = pl.pallas_call(
        kern,
        out_shape=jax.ShapeDtypeStruct((B, Ho * Wo, Cout), jnp.bfloat16),
        grid_spec=pltpu.PrefetchScalarGridSpec(
            num_scalar_prefetch=0,
            grid=(B,),
            in_specs=[
                pl.BlockSpec((1, Hq, Wq, CP), lambda b: (b, 0, 0, 0)),
                pl.BlockSpec(wp.shape, lambda b: (0, 0, 0)),
                pl.BlockSpec((1, Cout), lambda b: (0, 0)),
            ],
            out_specs=pl.BlockSpec((1, Ho * Wo, Cout), lambda b: (b, 0, 0)),
        ),
        compiler_params=pltpu.CompilerParams(
            dimension_semantics=("parallel",)),
    )(xs, wp, bias2)
    return out.reshape(B, Ho, Wo, Cout)        # free, contiguous metadata op


def maxpool_3x3_s2_p1(x):
    B, H, W, C = x.shape
    xs, Ho, Wo = _space_to_depth(x, 3, 3, 2, 1, pad_value=-jnp.inf)
    Hq, Wq, CP = xs.shape[1], xs.shape[2], xs.shape[3]
    offs = tuple((kh // 2, kw // 2, (kh % 2) * 2 + (kw % 2))
                 for kh in range(3) for kw in range(3))
    kern = functools.partial(_maxpool_kernel, ho=Ho, wo=Wo, cin=C, offs=offs)
    return pl.pallas_call(
        kern,
        out_shape=jax.ShapeDtypeStruct((B, Ho, Wo, C), x.dtype),
        grid_spec=pltpu.PrefetchScalarGridSpec(
            num_scalar_prefetch=0,
            grid=(B,),
            in_specs=[pl.BlockSpec((1, Hq, Wq, CP), lambda b: (b, 0, 0, 0))],
            out_specs=pl.BlockSpec((1, Ho, Wo, C), lambda b: (b, 0, 0, 0)),
        ),
        compiler_params=pltpu.CompilerParams(
            dimension_semantics=("parallel",)),
    )(xs)


def gap_fc(x, w, bias):
    """x: (B, H*W, C) bf16, w: (C, ncls) bf16, bias: (ncls,) f32 -> (B, ncls)."""
    B, HW, C = x.shape
    ncls = w.shape[1]
    return pl.pallas_call(
        _gap_fc_kernel,
        out_shape=jax.ShapeDtypeStruct((B, ncls), jnp.float32),
    )(x, w, bias.astype(jnp.float32).reshape(1, ncls))


# ----------------------------------------------------------------------------
# Parameters (deterministic, synthetic).  BatchNorm (inference, running stats)
# is folded into conv scale/bias; weights cast to bf16 once at build time.
# ----------------------------------------------------------------------------
def make_conv_bn_params(key, kh, kw, cin, cout, eps=1e-5):
    k1, k2, k3, k4, k5 = jax.random.split(key, 5)
    fan_in = kh * kw * cin
    w = jax.random.normal(k1, (kh, kw, cin, cout), jnp.float32) / np.sqrt(fan_in)
    gamma = jax.random.uniform(k2, (cout,), jnp.float32, 0.5, 1.5)
    beta = jax.random.normal(k3, (cout,), jnp.float32) * 0.1
    mean = jax.random.normal(k4, (cout,), jnp.float32) * 0.1
    var = jax.random.uniform(k5, (cout,), jnp.float32, 0.5, 1.5)
    scale = gamma / jnp.sqrt(var + eps)
    w = (w * scale).astype(jnp.bfloat16)
    b = beta - mean * scale                       # bias stays f32 (epilogue)
    if kh == 1 and kw == 1:
        w = w.reshape(cin, cout)                  # 1x1 convs are plain matmuls
    return w, b


def build_resnet_params(key, num_blocks=(1, 1, 1, 1), num_classes=16,
                        width_multiplier=0.25):
    expansion = 4  # Bottleneck.expansion
    keys = iter(jax.random.split(key, 256))
    params = {}
    in_planes = int(64 * width_multiplier)
    params["stem_w"], params["stem_b"] = make_conv_bn_params(
        next(keys), 7, 7, 3, in_planes)
    stages = []
    for base, nb, stride0 in zip((64, 128, 256, 512), num_blocks, (1, 2, 2, 2)):
        planes = int(base * width_multiplier)
        blocks = []
        for s in [stride0] + [1] * (nb - 1):
            blk = {"stride": s}
            blk["w1"], blk["b1"] = make_conv_bn_params(next(keys), 1, 1,
                                                       in_planes, planes)
            blk["w2"], blk["b2"] = make_conv_bn_params(next(keys), 3, 3,
                                                       planes, planes)
            blk["w3"], blk["b3"] = make_conv_bn_params(next(keys), 1, 1,
                                                       planes, expansion * planes)
            if s != 1 or in_planes != expansion * planes:
                blk["ws"], blk["bs"] = make_conv_bn_params(
                    next(keys), 1, 1, in_planes, expansion * planes)
            blocks.append(blk)
            in_planes = expansion * planes
        stages.append(blocks)
    params["stages"] = stages
    fc_in = int(512 * expansion * width_multiplier)
    kfc1, kfc2 = jax.random.split(next(keys))
    params["fc_w"] = (jax.random.normal(kfc1, (fc_in, num_classes), jnp.float32)
                      / np.sqrt(fc_in)).astype(jnp.bfloat16)
    params["fc_b"] = jax.random.normal(kfc2, (num_classes,), jnp.float32) * 0.1
    return params


# ----------------------------------------------------------------------------
# Forward pass (matches ResNet.forward with Bottleneck blocks)
# ----------------------------------------------------------------------------
def bottleneck_forward(x, blk):
    s = blk["stride"]
    B, H, W, Cin = x.shape
    planes = blk["w1"].shape[1]
    cout = blk["w3"].shape[1]

    # conv1: 1x1 + BN + ReLU  (plain matmul over flattened pixels)
    h1 = pallas_matmul(x.reshape(B * H * W, Cin), blk["w1"], blk["b1"],
                       act="relu").reshape(B, H, W, planes)
    # conv2: 3x3 (stride s, pad 1) + BN + ReLU  (window-grouped Pallas conv)
    h2 = conv2d_spatial(h1, blk["w2"], blk["b2"], stride=s, padding=1,
                        act="relu")
    _, Ho, Wo, _ = h2.shape
    M = B * Ho * Wo

    # conv3: 1x1 + BN with the shortcut and final ReLU fused into one kernel.
    if "ws" in blk:
        xs = x if s == 1 else x[:, ::s, ::s, :]          # tiny XLA slice
        y = pallas_matmul(h2.reshape(M, planes), blk["w3"], blk["b3"],
                          shortcut=(xs.reshape(M, Cin), blk["ws"], blk["bs"]))
    else:
        y = pallas_matmul(h2.reshape(M, planes), blk["w3"], blk["b3"],
                          residual=x.reshape(M, cout))
    return y.reshape(B, Ho, Wo, cout)


def resnet_forward(params, x_nchw):
    # NCHW -> NHWC, cast to bf16 exactly once.
    x = jnp.transpose(x_nchw, (0, 2, 3, 1)).astype(jnp.bfloat16)
    x = conv2d_spatial(x, params["stem_w"], params["stem_b"],
                       stride=2, padding=3, act="relu")    # 7x7/s2 + BN+ReLU
    x = maxpool_3x3_s2_p1(x)
    for stage in params["stages"]:
        for blk in stage:
            x = bottleneck_forward(x, blk)
    B, H, W, C = x.shape
    return gap_fc(x.reshape(B, H * W, C), params["fc_w"], params["fc_b"])


# ----------------------------------------------------------------------------
if __name__ == "__main__":
    key = jax.random.PRNGKey(0)
    pkey, xkey = jax.random.split(key)

    # Small ResNet(Bottleneck, [1,1,1,1], num_classes=16, width_multiplier=0.25)
    params = build_resnet_params(pkey, num_blocks=(1, 1, 1, 1),
                                 num_classes=16, width_multiplier=0.25)
    x = jax.random.normal(xkey, (2, 3, 32, 32), jnp.float32)   # NCHW like torch

    # --- sanity: fused matmul kernels (bias+ReLU, residual, fused shortcut) --
    a = jax.random.normal(jax.random.PRNGKey(1), (100, 147), jnp.float32)
    b = jax.random.normal(jax.random.PRNGKey(2), (147, 33), jnp.float32) * 0.1
    bias = jax.random.normal(jax.random.PRNGKey(3), (33,), jnp.float32)
    a16, b16 = a.astype(jnp.bfloat16), b.astype(jnp.bfloat16)
    a_np = np.asarray(a16.astype(jnp.float32))
    b_np = np.asarray(b16.astype(jnp.float32))

    got = np.asarray(pallas_matmul(a16, b16, bias, act="relu",
                                   out_dtype=jnp.float32))
    ref = np.maximum(a_np @ b_np + np.asarray(bias), 0.0)
    np.testing.assert_allclose(got, ref, rtol=2e-2, atol=2e-2)

    r16 = jax.random.normal(jax.random.PRNGKey(4), (100, 33),
                            jnp.float32).astype(jnp.bfloat16)
    got = np.asarray(pallas_matmul(a16, b16, bias, residual=r16,
                                   out_dtype=jnp.float32))
    ref = np.maximum(a_np @ b_np + np.asarray(bias)
                     + np.asarray(r16.astype(jnp.float32)), 0.0)
    np.testing.assert_allclose(got, ref, rtol=2e-2, atol=2e-2)

    xsc = jax.random.normal(jax.random.PRNGKey(8), (100, 51),
                            jnp.float32).astype(jnp.bfloat16)
    wsc = (jax.random.normal(jax.random.PRNGKey(9), (51, 33), jnp.float32)
           * 0.1).astype(jnp.bfloat16)
    bsc = jax.random.normal(jax.random.PRNGKey(10), (33,), jnp.float32)
    got = np.asarray(pallas_matmul(a16, b16, bias, shortcut=(xsc, wsc, bsc),
                                   out_dtype=jnp.float32))
    ref = np.maximum(a_np @ b_np + np.asarray(bias)
                     + np.asarray(xsc.astype(jnp.float32))
                     @ np.asarray(wsc.astype(jnp.float32)) + np.asarray(bsc),
                     0.0)
    np.testing.assert_allclose(got, ref, rtol=2e-2, atol=2e-2)

    # --- sanity: window-grouped 3x3/s2 conv kernel vs lax.conv ---------------
    xc = jax.random.normal(jax.random.PRNGKey(5), (2, 8, 8, 32),
                           jnp.float32).astype(jnp.bfloat16)
    wc = (jax.random.normal(jax.random.PRNGKey(6), (3, 3, 32, 32),
                            jnp.float32) * 0.1).astype(jnp.bfloat16)
    bc = jax.random.normal(jax.random.PRNGKey(7), (32,), jnp.float32)
    got = np.asarray(conv2d_spatial(xc, wc, bc, stride=2, padding=1,
                                    act="relu").astype(jnp.float32))
    ref = jax.lax.conv_general_dilated(
        xc.astype(jnp.float32), wc.astype(jnp.float32),
        window_strides=(2, 2), padding=((1, 1), (1, 1)),
        dimension_numbers=("NHWC", "HWIO", "NHWC"))
    ref = np.maximum(np.asarray(ref) + np.asarray(bc), 0.0)
    np.testing.assert_allclose(got, ref, rtol=2e-2, atol=2e-2)

    # --- sanity: stem-style 7x7/s2/p3 conv (Cin=3) vs lax.conv ---------------
    x7 = jax.random.normal(jax.random.PRNGKey(11), (1, 12, 12, 3),
                           jnp.float32).astype(jnp.bfloat16)
    w7 = (jax.random.normal(jax.random.PRNGKey(12), (7, 7, 3, 8),
                            jnp.float32) * 0.1).astype(jnp.bfloat16)
    b7 = jax.random.normal(jax.random.PRNGKey(13), (8,), jnp.float32)
    got = np.asarray(conv2d_spatial(x7, w7, b7, stride=2, padding=3,
                                    act="relu").astype(jnp.float32))
    ref = jax.lax.conv_general_dilated(
        x7.astype(jnp.float32), w7.astype(jnp.float32),
        window_strides=(2, 2), padding=((3, 3), (3, 3)),
        dimension_numbers=("NHWC", "HWIO", "NHWC"))
    ref = np.maximum(np.asarray(ref) + np.asarray(b7), 0.0)
    np.testing.assert_allclose(got, ref, rtol=2e-2, atol=2e-2)

    # --- full forward ---------------------------------------------------------
    fwd = jax.jit(lambda inp: resnet_forward(params, inp))
    out = jax.block_until_ready(fwd(x))
    assert out.shape == (2, 16) and out.dtype == jnp.float32
    print("KERNEL_OK")
</pallas_src>

<mosaic_0001>
module attributes {stable_mosaic.version = 11 : i64} {
  func.func @_mm_bias_kernel(%arg0: i32, %arg1: memref<100x147xbf16, #tpu.memory_space<vmem>>, %arg2: memref<147x33xbf16, #tpu.memory_space<vmem>>, %arg3: memref<1x33xf32, #tpu.memory_space<vmem>>, %arg4: memref<100x33xf32, #tpu.memory_space<vmem>>) attributes {dimension_semantics = [#tpu.dimension_semantics<parallel>], iteration_bounds = array<i64: 1>, scalar_prefetch = 0 : i64, scratch_operands = 0 : i64, tpu.core_type = #tpu.core_type<tc>, window_params = [{transform_indices = @transform_0, window_bounds = array<i64: 100, 147>}, {pipeline_mode = #tpu.pipeline_mode<synchronous>, transform_indices = @transform_1, window_bounds = array<i64: 147, 33>}, {pipeline_mode = #tpu.pipeline_mode<synchronous>, transform_indices = @transform_2, window_bounds = array<i64: 1, 33>}, {transform_indices = @transform_3, window_bounds = array<i64: 100, 33>}]} {
    %c0 = arith.constant 0 : index
    %c0_0 = arith.constant 0 : index
    %0 = vector.load %arg1[%c0, %c0_0] : memref<100x147xbf16, #tpu.memory_space<vmem>>, vector<100x147xbf16>
    %c0_1 = arith.constant 0 : index
    %c0_2 = arith.constant 0 : index
    %1 = vector.load %arg2[%c0_1, %c0_2] : memref<147x33xbf16, #tpu.memory_space<vmem>>, vector<147x33xbf16>
    %cst = arith.constant dense<0.000000e+00> : vector<100x33xf32>
    %2 = tpu.matmul %0, %1, %cst {dimension_numbers = #tpu.dot_dimension_numbers<[1], [0], [0], [1], [0, 0, 1, 1], [], []>} : vector<100x147xbf16>, vector<147x33xbf16>, vector<100x33xf32> -> vector<100x33xf32>
    %c0_3 = arith.constant 0 : index
    %c0_4 = arith.constant 0 : index
    %3 = vector.load %arg3[%c0_3, %c0_4] : memref<1x33xf32, #tpu.memory_space<vmem>>, vector<1x33xf32>
    %4 = vector.broadcast %3 : vector<1x33xf32> to vector<100x33xf32>
    %5 = arith.addf %2, %4 : vector<100x33xf32>
    %cst_5 = arith.constant 0.000000e+00 : f32
    %6 = vector.broadcast %cst_5 : f32 to vector<100x33xf32>
    %7 = arith.maximumf %5, %6 : vector<100x33xf32>
    %c0_6 = arith.constant 0 : index
    %c0_7 = arith.constant 0 : index
    %8 = vector.load %arg4[%c0_6, %c0_7] : memref<100x33xf32, #tpu.memory_space<vmem>>, vector<100x33xf32>
    tpu.vector_store %arg4[%c0_6, %c0_7], %7 {strides = array<i32>} : memref<100x33xf32, #tpu.memory_space<vmem>>, vector<100x33xf32>,
    return
  }
  func.func @transform_0(%arg0: i32) -> (i32, i32) {
    %c0_i32 = arith.constant 0 : i32
    %c0_i32_0 = arith.constant 0 : i32
    return %arg0, %c0_i32 : i32, i32
  }
  func.func @transform_1(%arg0: i32) -> (i32, i32) {
    %c0_i32 = arith.constant 0 : i32
    %c0_i32_0 = arith.constant 0 : i32
    %c0_i32_1 = arith.constant 0 : i32
    return %c0_i32, %c0_i32_0 : i32, i32
  }
  func.func @transform_2(%arg0: i32) -> (i32, i32) {
    %c0_i32 = arith.constant 0 : i32
    %c0_i32_0 = arith.constant 0 : i32
    %c0_i32_1 = arith.constant 0 : i32
    return %c0_i32, %c0_i32_0 : i32, i32
  }
  func.func @transform_3(%arg0: i32) -> (i32, i32) {
    %c0_i32 = arith.constant 0 : i32
    %c0_i32_0 = arith.constant 0 : i32
    return %arg0, %c0_i32 : i32, i32
  }
}

</mosaic_0001>

<bundles_post_ra>
// kernel: tpu_custom_call.1
= control target key start
LH: loop header
LB: loop body
LE: loop exit
PB: predicated region body
PF: predicated region fallthrough
CT: control target
= control target key end

     0   :  { %v404_v0 = vmov 0   ;;  %vm171_vm0 = vcmask 154624   ;;  %vm193_vm1 = vcmask 1040384   ;;  %vm194_vm2 = vcmask 1041408   ;;  %s571_s1 = inlined_call_operand.vmem [shape: bf16[147,33], index: 1, kind: input, shape index: {}]   ;;  %s572_s0 = inlined_call_operand.vmem [shape: bf16[100,147], index: 0, kind: input, shape index: {}]   ;;  %s573_s2 = inlined_call_operand.vmem [shape: f32[1,33], index: 2, kind: input, shape index: {}]   ;;  %s574_s3 = inlined_call_operand.vmem [shape: f32[100,33], index: 3, kind: output, shape index: {}]  }
   0x1   :  { %200 = vmatprep.subr.bf16.mxu0 %v404_v0  ;;  %v374_v1 = vld [vmem:[%s571_s1] sm:$0xff]   ;;  %352 = vmatprep.subr.bf16.mxu1 %v404_v0  ;;  %v375_v2 = vld [vmem:[%s571_s1 + $0x8] sm:$0xff]   ;;  %v376_v3 = vld [vmem:[%s571_s1 + $0x10] sm:$0xff]   ;;  %v405_v11 = vmov 65535   ;;  %vm301_vm3 = vcmask 269312   ;;  %vm314_vm4 = vcmask 265216  }
   0x2   :  { %201 = vmatpush1.bf16.msra.mxu0 %v374_v1  ;;  %362 = vmatpush1.bf16.msra.mxu1 %v374_v1  ;;  %v377_v4 = vld [vmem:[%s571_s1 + $0x18] sm:$0xff]   ;;  %v386_v5 = vld [vmem:[%s572_s0 + $0x4] ss:$8 sps:$4 sm:$0xff]   ;;  %v380_v9 = vld [vmem:[%s571_s1 + $0x30] sm:$0xff]   ;;  %v195_v12 = vsel %vm193_vm1, 4294967295, %v405_v11 }
   0x3   :  { %202 = vmatprep.subr.bf16.mxu0 %v404_v0  ;;  %353 = vmatprep.subr.bf16.mxu1 %v404_v0  ;;  %v389_v6 = vld [vmem:[%s572_s0 + $0x44] ss:$8 sps:$4 sm:$0xff]   ;;  %v381_v10 = vld [vmem:[%s571_s1 + $0x38] sm:$0xff]   ;;  %v383_v14 = vld [vmem:[%s571_s1 + $0x48] ss:$0 sps:$4 sm:$0x33]  }
   0x4   :  { %345 = vmatprep.mubr.msk.bf16.mxu0 %vm171_vm0, %v386_v5  ;;  %v378_v7 = vld [vmem:[%s571_s1 + $0x20] sm:$0xff]   ;;  %349 = vmatprep.mubr.msk.bf16.mxu1 %vm171_vm0, %v389_v6  ;;  %v379_v8 = vld [vmem:[%s571_s1 + $0x28] sm:$0xff]   ;;  %v196_v15 = vsel %vm194_vm2, %v195_v12, 0  ;;  %v390_v19 = vld [vmem:[%s572_s0 + $0x14] ss:$8 sps:$4 sm:$0xff]  }
   0x5   :  { %v382_v13 = vld [vmem:[%s571_s1 + $0x40] sm:$0xff]   ;;  %v198_v16 = vand.u32 %v383_v14, %v196_v15  ;;  %v393_v20 = vld [vmem:[%s572_s0 + $0x54] ss:$8 sps:$4 sm:$0xff]   ;;  %v392_v22 = vld [vmem:[%s572_s0 + $0x10] ss:$8 sps:$4 sm:$0xff]  }
   0x6   :  { %203 = vmatpush1.bf16.msra.mxu0 %v375_v2  ;;  %363 = vmatpush1.bf16.msra.mxu1 %v375_v2  ;;  %v384_v17 = vld [vmem:[%s572_s0] ss:$8 sps:$4 sm:$0xff]   ;;  %v397_v23 = vld [vmem:[%s572_s0 + $0x50] ss:$8 sps:$4 sm:$0xff]   ;;  %v395_v24 = vld [vmem:[%s572_s0 + $0x24] ss:$8 sps:$4 sm:$0xff]  }
   0x7   :  { %204 = vmatprep.subr.bf16.mxu0 %v404_v0  ;;  %354 = vmatprep.subr.bf16.mxu1 %v404_v0  ;;  %v387_v18 = vld [vmem:[%s572_s0 + $0x40] ss:$8 sps:$4 sm:$0xff]   ;;  %v400_v28 = vld [vmem:[%s572_s0 + $0x34] ss:$8 sps:$4 sm:$0xff]   ;;  %v403_v29 = vld [vmem:[%s572_s0 + $0x30] ss:$8 sps:$4 sm:$0xff]  }
   0x8   :  { %v27_v21 = vld [vmem:[%s572_s0 + $0x60] sm:$0x33] }
   0x9   :  { %v334_v25 = vcombine.high %v27_v21, %v27_v21  ;;  %v398_v26 = vld [vmem:[%s572_s0 + $0x20] ss:$8 sps:$4 sm:$0xff]   ;;  %v333_v27 = vcombine.low %v27_v21, %v27_v21 }
   0xa   :  { %205 = vmatpush1.bf16.msra.mxu0 %v376_v3  ;;  %364 = vmatpush1.bf16.msra.mxu1 %v376_v3  ;;  %v505_v30 = vld [vmem:[%s573_s2] ss:$0 sm:$0xff] }
   0xb   :  { %206 = vmatprep.subr.bf16.mxu0 %v404_v0  ;;  %355 = vmatprep.subr.bf16.mxu1 %v404_v0 }
   0xe   :  { %207 = vmatpush1.bf16.msra.mxu0 %v377_v4  ;;  %365 = vmatpush1.bf16.msra.mxu1 %v377_v4 }
   0xf   :  { %208 = vmatprep.subr.bf16.mxu0 %v404_v0  ;;  %356 = vmatprep.subr.bf16.mxu1 %v404_v0 }
  0x12   :  { %209 = vmatpush1.bf16.msra.mxu0 %v378_v7  ;;  %366 = vmatpush1.bf16.msra.mxu1 %v378_v7 }
  0x13   :  { %210 = vmatprep.subr.bf16.mxu0 %v404_v0  ;;  %357 = vmatprep.subr.bf16.mxu1 %v404_v0 }
  0x16   :  { %211 = vmatpush1.bf16.msra.mxu0 %v379_v8  ;;  %367 = vmatpush1.bf16.msra.mxu1 %v379_v8 }
  0x17   :  { %212 = vmatprep.subr.bf16.mxu0 %v404_v0  ;;  %358 = vmatprep.subr.bf16.mxu1 %v404_v0 }
  0x1a   :  { %213 = vmatpush1.bf16.msra.mxu0 %v380_v9  ;;  %368 = vmatpush1.bf16.msra.mxu1 %v380_v9 }
  0x1b   :  { %214 = vmatprep.subr.bf16.mxu0 %v404_v0  ;;  %359 = vmatprep.subr.bf16.mxu1 %v404_v0 }
  0x1e   :  { %215 = vmatpush1.bf16.msra.mxu0 %v381_v10  ;;  %369 = vmatpush1.bf16.msra.mxu1 %v381_v10 }
  0x1f   :  { %216 = vmatprep.subr.bf16.mxu0 %v404_v0  ;;  %360 = vmatprep.subr.bf16.mxu1 %v404_v0 }
  0x22   :  { %217 = vmatpush1.bf16.msra.mxu0 %v382_v13  ;;  %370 = vmatpush1.bf16.msra.mxu1 %v382_v13 }
  0x23   :  { %218 = vmatprep.subr.bf16.mxu0 %v404_v0  ;;  %361 = vmatprep.subr.bf16.mxu1 %v404_v0 }
  0x26   :  { %219 = vmatpush1.bf16.msra.mxu0 %v198_v16  ;;  %371 = vmatpush1.bf16.msra.mxu1 %v198_v16 }
  0x29   :  { %233 = vmatmul.mubr.bf16.vlgmr.msra.gmra.mrb[0].mxu0 %v384_v17  ;;  %265 = vmatmul.mubr.bf16.vlgmr.msra.gmra.mrb[0].mxu1 %v387_v18 }
  0x2a   :  { %346 = vmatprep.mubr.msk.bf16.mxu0 %vm171_vm0, %v390_v19  ;;  %350 = vmatprep.mubr.msk.bf16.mxu1 %vm171_vm0, %v393_v20 }
  0x31   :  { %241 = vmatmul.mubr.bf16.gmra.mrb[4].mxu0 %v392_v22  ;;  %273 = vmatmul.mubr.bf16.gmra.mrb[4].mxu1 %v397_v23 }
  0x32   :  { %347 = vmatprep.mubr.msk.bf16.mxu0 %vm171_vm0, %v395_v24  ;;  %351 = vmatprep.mubr.msk.bf16.mxu1 %vm171_vm0, %v334_v25 }
  0x39   :  { %249 = vmatmul.mubr.bf16.gmra.mrb[8].mxu0 %v398_v26  ;;  %281 = vmatmul.mubr.bf16.gmra.mrb[8].mxu1 %v333_v27 }
  0x3a   :  { %348 = vmatprep.mubr.msk.bf16.mxu0 %vm171_vm0, %v400_v28 }
  0x41   :  { %257 = vmatmul.mubr.bf16.gmra.mrb[12].mxu0 %v403_v29 }
  0xfc   :  { %v234_v31 = vpop.f32.mrb[0].mxu0  ;;  %v266_v32 = vpop.f32.mrb[0].mxu1 }
  0xfd   :  { %v235_v33 = vadd.f32 %v505_v30, %v234_v31  ;;  %v236_v34 = vpop.f32.mrb[1].mxu0  ;;  %v267_v35 = vadd.f32 %v505_v30, %v266_v32  ;;  %v268_v36 = vpop.f32.mrb[1].mxu1 }
  0xfe   :  { %v237_v37 = vpop.f32.mrb[2].mxu0  ;;  %v269_v38 = vpop.f32.mrb[2].mxu1 }
  0xff   :  { %v288_v39 = vmax.f32 %v235_v33, 0.0  ;;  %v238_v40 = vadd.f32 %v505_v30, %v237_v37  ;;  %v239_v41 = vpop.f32.mrb[3].mxu0  ;;  %v296_v42 = vmax.f32 %v267_v35, 0.0  ;;  %v270_v43 = vadd.f32 %v505_v30, %v269_v38  ;;  %v271_v44 = vpop.f32.mrb[3].mxu1 }
 0x101   :  { %302 = vst.msk [vmem:[%s574_s3] sm:$0xff] %vm301_vm3, %v288_v39  ;;  %v289_v45 = vmax.f32 %v238_v40, 0.0  ;;  %310 = vst.msk [vmem:[%s574_s3 + $0x40] sm:$0xff] %vm301_vm3, %v296_v42  ;;  %v297_v46 = vmax.f32 %v270_v43, 0.0 }
 0x103   :  { %303 = vst.msk [vmem:[%s574_s3 + $0x8] sm:$0xff] %vm301_vm3, %v289_v45  ;;  %311 = vst.msk [vmem:[%s574_s3 + $0x48] sm:$0xff] %vm301_vm3, %v297_v46 }
 0x104   :  { %v242_v47 = vpop.f32.mrb[4].mxu0  ;;  %v274_v48 = vpop.f32.mrb[4].mxu1 }
 0x105   :  { %v243_v49 = vadd.f32 %v505_v30, %v242_v47  ;;  %v244_v50 = vpop.f32.mrb[5].mxu0  ;;  %v275_v51 = vadd.f32 %v505_v30, %v274_v48  ;;  %v276_v52 = vpop.f32.mrb[5].mxu1 }
 0x106   :  { %v245_v53 = vpop.f32.mrb[6].mxu0  ;;  %v277_v54 = vpop.f32.mrb[6].mxu1 }
 0x107   :  { %v290_v55 = vmax.f32 %v243_v49, 0.0  ;;  %v246_v56 = vadd.f32 %v505_v30, %v245_v53  ;;  %v247_v57 = vpop.f32.mrb[7].mxu0  ;;  %v298_v58 = vmax.f32 %v275_v51, 0.0  ;;  %v278_v59 = vadd.f32 %v505_v30, %v277_v54  ;;  %v279_v60 = vpop.f32.mrb[7].mxu1 }
 0x109   :  { %304 = vst.msk [vmem:[%s574_s3 + $0x10] sm:$0xff] %vm301_vm3, %v290_v55  ;;  %v291_v61 = vmax.f32 %v246_v56, 0.0  ;;  %312 = vst.msk [vmem:[%s574_s3 + $0x50] sm:$0xff] %vm301_vm3, %v298_v58  ;;  %v299_v62 = vmax.f32 %v278_v59, 0.0 }
 0x10b   :  { %305 = vst.msk [vmem:[%s574_s3 + $0x18] sm:$0xff] %vm301_vm3, %v291_v61  ;;  %313 = vst.msk [vmem:[%s574_s3 + $0x58] sm:$0xff] %vm301_vm3, %v299_v62 }
 0x10c   :  { %v250_v63 = vpop.f32.mrb[8].mxu0  ;;  %v282_v0 = vpop.f32.mrb[8].mxu1 }
 0x10d   :  { %v251_v1 = vadd.f32 %v505_v30, %v250_v63  ;;  %v252_v2 = vpop.f32.mrb[9].mxu0  ;;  %v283_v3 = vadd.f32 %v505_v30, %v282_v0  ;;  %v284_v4 = vpop.f32.mrb[9].mxu1 }
 0x10e   :  { %v253_v5 = vpop.f32.mrb[10].mxu0  ;;  %v285_v6 = vpop.f32.mrb[10].mxu1 }
 0x10f   :  { %v292_v7 = vmax.f32 %v251_v1, 0.0  ;;  %v254_v8 = vadd.f32 %v505_v30, %v253_v5  ;;  %v255_v9 = vpop.f32.mrb[11].mxu0  ;;  %v300_v10 = vmax.f32 %v283_v3, 0.0  ;;  %v286_v11 = vpop.f32.mrb[11].mxu1 }
 0x111   :  { %306 = vst.msk [vmem:[%s574_s3 + $0x20] sm:$0xff] %vm301_vm3, %v292_v7  ;;  %v293_v12 = vmax.f32 %v254_v8, 0.0 }
 0x112   :  { %315 = vst.msk [vmem:[%s574_s3 + $0x60] sm:$0xf] %vm314_vm4, %v300_v10 }
 0x113   :  { %307 = vst.msk [vmem:[%s574_s3 + $0x28] sm:$0xff] %vm301_vm3, %v293_v12 }
 0x114   :  { %v258_v13 = vpop.f32.mrb[12].mxu0 }
 0x115   :  { %v259_v14 = vadd.f32 %v505_v30, %v258_v13  ;;  %v260_v15 = vpop.f32.mrb[13].mxu0 }
 0x116   :  { %v261_v16 = vpop.f32.mrb[14].mxu0 }
 0x117   :  { %v294_v17 = vmax.f32 %v259_v14, 0.0  ;;  %v262_v18 = vadd.f32 %v505_v30, %v261_v16  ;;  %v263_v19 = vpop.f32.mrb[15].mxu0 }
 0x119   :  { %308 = vst.msk [vmem:[%s574_s3 + $0x30] sm:$0xff] %vm301_vm3, %v294_v17  ;;  %v295_v20 = vmax.f32 %v262_v18, 0.0 }
 0x11b   :  { %309 = vst.msk [vmem:[%s574_s3 + $0x38] sm:$0xff] %vm301_vm3, %v295_v20 }

</bundles_post_ra>
